<compile_context>
chip_gen: v7x
topology: tpu7x:2x2x1
jax: 0.10.0
libtpu: 0.0.40
codegen_flags: <defaults>
</compile_context>

<pallas_src>
import numpy as np
import jax
import jax.numpy as jnp
from jax.experimental import pallas as pl
from jax.experimental.pallas import tpu as pltpu


def _round_up(n, m):
    return ((n + m - 1) // m) * m


def _gelu_tanh(x):
    # tanh-form GELU (|diff| vs exact erf GELU < ~3e-3, inside test tolerance);
    # tanh lowers to the EUP, freeing the VALU slot.
    c = 0.7978845608028654  # sqrt(2/pi)
    return 0.5 * x * (1.0 + jnp.tanh(c * (x + 0.044715 * x * x * x)))


def _spec(shape, index_map, single_buffer=False):
    # Single-buffer operands whose index_map is constant (double-buffering a
    # never-changing block only wastes VMEM).  Fall back gracefully if this
    # JAX version does not expose pipeline_mode.
    if single_buffer:
        try:
            return pl.BlockSpec(shape, index_map, pipeline_mode=pl.Buffered(1))
        except TypeError:
            pass
    return pl.BlockSpec(shape, index_map)


# ------------------------------ Pallas kernel -------------------------------

def _mlp_block_kernel(x_ref, w1_ref, b1_ref, w2_ref, b2_ref, o_ref, acc_ref):
    # x_ref : (TR, Dp)  in-dtype   w1_ref: (Dp, TH) bf16   b1_ref: (1, TH) f32
    # w2_ref: (TH, Dp)  bf16       b2_ref: (1, Dp)  f32
    # o_ref : (TR, Dp)  out-dtype  acc_ref: (TR, Dp) f32 scratch
    hi = pl.program_id(1)

    @pl.when(hi == 0)
    def _():
        acc_ref[...] = jnp.zeros_like(acc_ref)

    xb = x_ref[...].astype(jnp.bfloat16)                      # VPU cast, hidden under MXU/DMA
    h = jnp.dot(xb, w1_ref[...],
                preferred_element_type=jnp.float32) + b1_ref[...]   # (TR, TH) f32
    h = _gelu_tanh(h)                                               # EUP
    acc_ref[...] += jnp.dot(h.astype(jnp.bfloat16), w2_ref[...],
                            preferred_element_type=jnp.float32)     # (TR, Dp) f32

    @pl.when(hi == pl.num_programs(1) - 1)
    def _():
        o_ref[...] = (acc_ref[...] + b2_ref[...]).astype(o_ref.dtype)


# ------------------------- one-time parameter prep ---------------------------

def prepare_mlp_params(w1, b1, w2, b2, *, block_h=1024):
    """Pad to lane-dense multiples of 128, cast weights to bf16 (call-invariant)."""
    D, H = w1.shape
    Dp = _round_up(D, 128)
    Hp = _round_up(H, 128)
    if Hp <= block_h:
        th = Hp                       # single hidden chunk
    else:
        th = block_h                  # H-tiling for large mlp_dim (v7x VMEM)
        Hp = _round_up(Hp, th)
    n_h = Hp // th

    # Zero padding is exact: padded rows/cols contribute nothing to valid outputs.
    w1p = jnp.pad(jnp.asarray(w1), ((0, Dp - D), (0, Hp - H))).astype(jnp.bfloat16)
    w2p = jnp.pad(jnp.asarray(w2), ((0, Hp - H), (0, Dp - D))).astype(jnp.bfloat16)
    b1p = jnp.pad(jnp.asarray(b1), (0, Hp - H)).reshape(1, Hp).astype(jnp.float32)
    b2p = jnp.pad(jnp.asarray(b2), (0, Dp - D)).reshape(1, Dp).astype(jnp.float32)
    return dict(w1=w1p, b1=b1p, w2=w2p, b2=b2p,
                D=D, H=H, Dp=Dp, Hp=Hp, th=th, n_h=n_h)


# -------------------------------- wrapper ------------------------------------

def mlp_block(x, params, *, block_rows=256):
    """out = Linear2(GELU(Linear1(x))); Dropout(p=0.0) is an identity."""
    D, Dp, th, n_h = params["D"], params["Dp"], params["th"], params["n_h"]
    assert x.shape[-1] == D, (x.shape, D)
    lead = x.shape[:-1]
    N = int(np.prod(lead)) if lead else 1

    block_rows = _round_up(block_rows, 16)
    tr = min(block_rows, _round_up(N, 16))
    Np = _round_up(N, tr)
    # v7x has 2 TensorCores: make sure the "parallel" row axis has >=2 tiles.
    if Np // tr < 2 and N >= 32:
        tr = _round_up((N + 1) // 2, 16)
        Np = _round_up(N, tr)

    x2 = x.reshape(N, D)
    if (Np, Dp) != (N, D):                       # only pad when actually needed
        x2 = jnp.pad(x2, ((0, Np - N), (0, Dp - D)))

    out_dtype = x.dtype
    xb = jnp.dtype(x2.dtype).itemsize
    ob = jnp.dtype(out_dtype).itemsize
    w_buf = 1 if n_h == 1 else 2                 # weight buffers actually allocated
    est = (tr * Dp * xb * 2                      # x tile, double-buffered
           + 2 * (Dp * th) * 2 * w_buf           # W1 + W2 chunks (bf16)
           + (th + Dp) * 4 * 2                   # biases
           + tr * Dp * ob * 2                    # output tile, double-buffered
           + tr * Dp * 4                         # f32 accumulator scratch
           + tr * th * 6)                        # hidden slab (f32 + bf16 copy)
    vmem_limit = int(min(max(2 * est, 16 << 20), 60 << 20))

    out = pl.pallas_call(
        _mlp_block_kernel,
        out_shape=jax.ShapeDtypeStruct((Np, Dp), out_dtype),
        grid=(Np // tr, n_h),
        in_specs=[
            _spec((tr, Dp), lambda i, h: (i, 0)),                              # x
            _spec((Dp, th), lambda i, h: (0, h), single_buffer=(n_h == 1)),    # W1
            _spec((1, th),  lambda i, h: (0, h), single_buffer=(n_h == 1)),    # b1
            _spec((th, Dp), lambda i, h: (h, 0), single_buffer=(n_h == 1)),    # W2
            _spec((1, Dp),  lambda i, h: (0, 0), single_buffer=True),          # b2
        ],
        out_specs=pl.BlockSpec((tr, Dp), lambda i, h: (i, 0)),
        scratch_shapes=[pltpu.VMEM((tr, Dp), jnp.float32)],
        compiler_params=pltpu.CompilerParams(
            dimension_semantics=("parallel", "arbitrary"),
            vmem_limit_bytes=vmem_limit),
    )(x2, params["w1"], params["b1"], params["w2"], params["b2"])

    return out[:N, :D].reshape(*lead, D)


# ---------------------------- pure-JAX reference -----------------------------

def mlp_block_reference(x, w1, b1, w2, b2):
    # Exact-erf GELU, matching PyTorch nn.GELU() default; all f32.
    h = jax.nn.gelu(x @ w1 + b1, approximate=False)
    return h @ w2 + b2


# ----------------------------------- main ------------------------------------

if __name__ == "__main__":
    # Small but lane-dense shapes: batch=2, seq=64, dim=128, mlp_dim=256.
    B, S, dim, mlp_dim = 2, 64, 128, 256

    key = jax.random.PRNGKey(0)
    kx, k1, k2, k3, k4 = jax.random.split(key, 5)
    x = jax.random.normal(kx, (B, S, dim), dtype=jnp.float32)
    w1 = 0.02 * jax.random.normal(k1, (dim, mlp_dim), dtype=jnp.float32)
    b1 = 0.02 * jax.random.normal(k2, (mlp_dim,), dtype=jnp.float32)
    w2 = 0.02 * jax.random.normal(k3, (mlp_dim, dim), dtype=jnp.float32)
    b2 = 0.02 * jax.random.normal(k4, (dim,), dtype=jnp.float32)

    params = prepare_mlp_params(w1, b1, w2, b2)          # one-time pad + bf16 cast
    out = jax.block_until_ready(mlp_block(x, params))
    ref = jax.block_until_ready(mlp_block_reference(x, w1, b1, w2, b2))

    assert out.shape == (B, S, dim), out.shape
    assert np.allclose(np.asarray(out), np.asarray(ref), atol=1e-2, rtol=1e-2), (
        float(np.max(np.abs(np.asarray(out) - np.asarray(ref)))))

    print("KERNEL_OK")
</pallas_src>

<mosaic_0001>
module attributes {stable_mosaic.version = 11 : i64} {
  func.func @_mlp_block_kernel(%arg0: i32, %arg1: i32, %arg2: memref<64x128xf32, #tpu.memory_space<vmem>>, %arg3: memref<128x256xbf16, #tpu.memory_space<vmem>>, %arg4: memref<1x256xf32, #tpu.memory_space<vmem>>, %arg5: memref<256x128xbf16, #tpu.memory_space<vmem>>, %arg6: memref<1x128xf32, #tpu.memory_space<vmem>>, %arg7: memref<64x128xf32, #tpu.memory_space<vmem>>, %arg8: memref<64x128xf32, #tpu.memory_space<vmem>>) attributes {dimension_semantics = [#tpu.dimension_semantics<parallel>, #tpu.dimension_semantics<arbitrary>], iteration_bounds = array<i64: 2, 1>, scalar_prefetch = 0 : i64, scratch_operands = 1 : i64, tpu.core_type = #tpu.core_type<tc>, window_params = [{transform_indices = @transform_0, window_bounds = array<i64: 64, 128>}, {pipeline_mode = #tpu.pipeline_mode<synchronous>, transform_indices = @transform_1, window_bounds = array<i64: 128, 256>}, {pipeline_mode = #tpu.pipeline_mode<synchronous>, transform_indices = @transform_2, window_bounds = array<i64: 1, 256>}, {pipeline_mode = #tpu.pipeline_mode<synchronous>, transform_indices = @transform_3, window_bounds = array<i64: 256, 128>}, {pipeline_mode = #tpu.pipeline_mode<synchronous>, transform_indices = @transform_4, window_bounds = array<i64: 1, 128>}, {transform_indices = @transform_5, window_bounds = array<i64: 64, 128>}]} {
    %c0_i32 = arith.constant 0 : i32
    %0 = arith.cmpi eq, %arg1, %c0_i32 : i32
    %1 = arith.extui %0 : i1 to i32
    %c0_i32_0 = arith.constant 0 : i32
    %2 = arith.cmpi ne, %1, %c0_i32_0 : i32
    scf.if %2 {
      %cst_19 = arith.constant 0.000000e+00 : f32
      %32 = vector.broadcast %cst_19 : f32 to vector<64x128xf32>
      %c0_20 = arith.constant 0 : index
      %c0_21 = arith.constant 0 : index
      %33 = vector.load %arg8[%c0_20, %c0_21] : memref<64x128xf32, #tpu.memory_space<vmem>>, vector<64x128xf32>
      tpu.vector_store %arg8[%c0_20, %c0_21], %32 {strides = array<i32>} : memref<64x128xf32, #tpu.memory_space<vmem>>, vector<64x128xf32>,
    } else {
    }
    %c0 = arith.constant 0 : index
    %c0_1 = arith.constant 0 : index
    %3 = vector.load %arg2[%c0, %c0_1] : memref<64x128xf32, #tpu.memory_space<vmem>>, vector<64x128xf32>
    %4 = arith.truncf %3 : vector<64x128xf32> to vector<64x128xbf16>
    %c0_2 = arith.constant 0 : index
    %c0_3 = arith.constant 0 : index
    %5 = vector.load %arg3[%c0_2, %c0_3] : memref<128x256xbf16, #tpu.memory_space<vmem>>, vector<128x256xbf16>
    %cst = arith.constant dense<0.000000e+00> : vector<64x256xf32>
    %6 = tpu.matmul %4, %5, %cst {dimension_numbers = #tpu.dot_dimension_numbers<[1], [0], [0], [1], [0, 0, 1, 1], [], []>} : vector<64x128xbf16>, vector<128x256xbf16>, vector<64x256xf32> -> vector<64x256xf32>
    %c0_4 = arith.constant 0 : index
    %c0_5 = arith.constant 0 : index
    %7 = vector.load %arg4[%c0_4, %c0_5] : memref<1x256xf32, #tpu.memory_space<vmem>>, vector<1x256xf32>
    %8 = vector.broadcast %7 : vector<1x256xf32> to vector<64x256xf32>
    %9 = arith.addf %6, %8 : vector<64x256xf32>
    %cst_6 = arith.constant 5.000000e-01 : f32
    %10 = vector.broadcast %cst_6 : f32 to vector<64x256xf32>
    %11 = arith.mulf %10, %9 : vector<64x256xf32>
    %cst_7 = arith.constant 4.471500e-02 : f32
    %12 = vector.broadcast %cst_7 : f32 to vector<64x256xf32>
    %13 = arith.mulf %12, %9 : vector<64x256xf32>
    %14 = arith.mulf %13, %9 : vector<64x256xf32>
    %15 = arith.mulf %14, %9 : vector<64x256xf32>
    %16 = arith.addf %9, %15 : vector<64x256xf32>
    %cst_8 = arith.constant 0.797884583 : f32
    %17 = vector.broadcast %cst_8 : f32 to vector<64x256xf32>
    %18 = arith.mulf %17, %16 : vector<64x256xf32>
    %19 = math.tanh %18 : vector<64x256xf32>
    %cst_9 = arith.constant 1.000000e+00 : f32
    %20 = vector.broadcast %cst_9 : f32 to vector<64x256xf32>
    %21 = arith.addf %20, %19 : vector<64x256xf32>
    %22 = arith.mulf %11, %21 : vector<64x256xf32>
    %c0_10 = arith.constant 0 : index
    %c0_11 = arith.constant 0 : index
    %23 = vector.load %arg8[%c0_10, %c0_11] : memref<64x128xf32, #tpu.memory_space<vmem>>, vector<64x128xf32>
    %24 = arith.truncf %22 : vector<64x256xf32> to vector<64x256xbf16>
    %c0_12 = arith.constant 0 : index
    %c0_13 = arith.constant 0 : index
    %25 = vector.load %arg5[%c0_12, %c0_13] : memref<256x128xbf16, #tpu.memory_space<vmem>>, vector<256x128xbf16>
    %cst_14 = arith.constant dense<0.000000e+00> : vector<64x128xf32>
    %26 = tpu.matmul %24, %25, %cst_14 {dimension_numbers = #tpu.dot_dimension_numbers<[1], [0], [0], [1], [0, 0, 1, 1], [], []>} : vector<64x256xbf16>, vector<256x128xbf16>, vector<64x128xf32> -> vector<64x128xf32>
    %27 = arith.addf %23, %26 : vector<64x128xf32>
    %c0_15 = arith.constant 0 : index
    %c0_16 = arith.constant 0 : index
    %28 = vector.load %arg8[%c0_15, %c0_16] : memref<64x128xf32, #tpu.memory_space<vmem>>, vector<64x128xf32>
    tpu.vector_store %arg8[%c0_15, %c0_16], %27 {strides = array<i32>} : memref<64x128xf32, #tpu.memory_space<vmem>>, vector<64x128xf32>,
    %c0_i32_17 = arith.constant 0 : i32
    %29 = arith.cmpi eq, %arg1, %c0_i32_17 : i32
    %30 = arith.extui %29 : i1 to i32
    %c0_i32_18 = arith.constant 0 : i32
    %31 = arith.cmpi ne, %30, %c0_i32_18 : i32
    scf.if %31 {
      %c0_19 = arith.constant 0 : index
      %c0_20 = arith.constant 0 : index
      %32 = vector.load %arg8[%c0_19, %c0_20] : memref<64x128xf32, #tpu.memory_space<vmem>>, vector<64x128xf32>
      %c0_21 = arith.constant 0 : index
      %c0_22 = arith.constant 0 : index
      %33 = vector.load %arg6[%c0_21, %c0_22] : memref<1x128xf32, #tpu.memory_space<vmem>>, vector<1x128xf32>
      %34 = vector.broadcast %33 : vector<1x128xf32> to vector<64x128xf32>
      %35 = arith.addf %32, %34 : vector<64x128xf32>
      %c0_23 = arith.constant 0 : index
      %c0_24 = arith.constant 0 : index
      %36 = vector.load %arg7[%c0_23, %c0_24] : memref<64x128xf32, #tpu.memory_space<vmem>>, vector<64x128xf32>
      tpu.vector_store %arg7[%c0_23, %c0_24], %35 {strides = array<i32>} : memref<64x128xf32, #tpu.memory_space<vmem>>, vector<64x128xf32>,
    } else {
    }
    return
  }
  func.func @transform_0(%arg0: i32, %arg1: i32) -> (i32, i32) {
    %c0_i32 = arith.constant 0 : i32
    %c0_i32_0 = arith.constant 0 : i32
    return %arg0, %c0_i32 : i32, i32
  }
  func.func @transform_1(%arg0: i32, %arg1: i32) -> (i32, i32) {
    %c0_i32 = arith.constant 0 : i32
    %c0_i32_0 = arith.constant 0 : i32
    return %c0_i32, %arg1 : i32, i32
  }
  func.func @transform_2(%arg0: i32, %arg1: i32) -> (i32, i32) {
    %c0_i32 = arith.constant 0 : i32
    %c0_i32_0 = arith.constant 0 : i32
    return %c0_i32, %arg1 : i32, i32
  }
  func.func @transform_3(%arg0: i32, %arg1: i32) -> (i32, i32) {
    %c0_i32 = arith.constant 0 : i32
    %c0_i32_0 = arith.constant 0 : i32
    return %arg1, %c0_i32 : i32, i32
  }
  func.func @transform_4(%arg0: i32, %arg1: i32) -> (i32, i32) {
    %c0_i32 = arith.constant 0 : i32
    %c0_i32_0 = arith.constant 0 : i32
    %c0_i32_1 = arith.constant 0 : i32
    return %c0_i32, %c0_i32_0 : i32, i32
  }
  func.func @transform_5(%arg0: i32, %arg1: i32) -> (i32, i32) {
    %c0_i32 = arith.constant 0 : i32
    %c0_i32_0 = arith.constant 0 : i32
    return %arg0, %c0_i32 : i32, i32
  }
}

</mosaic_0001>

<bundles_post_ra>
// kernel: tpu_custom_call.1
= control target key start
LH: loop header
LB: loop body
LE: loop exit
PB: predicated region body
PF: predicated region fallthrough
CT: control target
= control target key end

     0   :  { %10 = vsyncpa [#allocation4], 0  ;;  %s1937_s0 = inlined_call_operand.hbm [shape: f32[128,128], index: 0, kind: input, shape index: {}]   ;;  %s1938_s1 = inlined_call_operand.hbm [shape: bf16[128,256], index: 1, kind: input, shape index: {}]   ;;  %s1939_s2 = inlined_call_operand.vmem [shape: f32[1,256], index: 2, kind: input, shape index: {}]   ;;  %s1940_s3 = inlined_call_operand.hbm [shape: bf16[256,128], index: 3, kind: input, shape index: {}]   ;;  %s1941_s4 = inlined_call_operand.vmem [shape: f32[1,128], index: 4, kind: input, shape index: {}]   ;;  %s1942_s5 = inlined_call_operand.hbm [shape: f32[128,128], index: 5, kind: output, shape index: {}]  }
   0x1   :  { %12 = vsyncpa [#allocation4 + $0x1], 0 }
   0x2   :  { %13 = vsyncpa [#allocation7], 0 }
   0x3   :  { %14 = vsyncpa [#allocation5], 0 }
   0x4   :  { %16 = vsyncpa [#allocation5 + $0x1], 0  ;;  %s1534_s18 = smov 0   ;;  %s1536_s19 = smov 0  }
   0x5   :  { %s1538_s20 = smov 0   ;;  %s1540_s21 = smov 0  }
   0x6   :  { %s1542_s22 = smov 0   ;;  %s1544_s23 = smov 0  }
   0x7 LB: > { %s1062_s24 = sadd.s32 4294967295, %s1491_s23   ;;  %s1063_s25 = sadd.s32 4294967294, %s1491_s23   ;;  %s1491_s23 = sphi %s1544_s23, %s22_s23   ;;  %s1487_s22 = sphi %s1542_s22, %s1966_s22   ;;  %s1483_s21 = sphi %s1540_s21, %s1965_s21   ;;  %s1479_s20 = sphi %s1538_s20, %s1964_s20   ;;  %s1475_s19 = sphi %s1536_s19, %s1963_s19   ;;  %s1471_s18 = sphi %s1534_s18, %s1962_s18  }
   0x8   : > { %p54_p0 = scmp.ne.s32.totalorder %s1475_s19, %s1471_s18  ;;  %p1568_p1 = scmp.eq.s32.totalorder %s1062_s24, 0 }
   0x9   : > { %p1572_p2 = scmp.eq.s32.totalorder %s1062_s24, 1  ;;  %p183_p3 = scmp.eq.s32.totalorder %s1063_s25, 1 }
   0xa   : > { %s1948_s26 = scalar_select %p1568_p1, 1, 0 }
   0xb   : > { %p1578_p4 = por %p1568_p1, %p54_p0  ;;  %p1064_p5 = scmp.ge.s32.totalorder %s1491_s23, 1 }
   0xc   : > { %p1583_p6 = por %p183_p3, %p54_p0  ;;  %p190_p7 = scmp.lt.s32.totalorder %s1491_s23, 3 }
   0xd   : > { %s1950_s28 = scalar_select %p1578_p4, 1, 0 }
   0xe   : > { %s1951_s29 = scalar_select %p1583_p6, 1, 0 }
   0xf   : > { %p1588_p8 = pnand %p1064_p5, %p190_p7  ;;  %s1493_s6 = smov [#allocation6]  }
  0x10   : > { %s205_s7 = sshll.u32 %s1493_s6, 4  ;;  %s1494_s9 = smov [#allocation8]   ;;  %s1592_s7 = int_to_ptr.vmem [resolvable:$true] %s205_s7 }
  0x11   : > { %p1169_p9 = pneg %p1588_p8  ;;  %s229_s10 = sshll.u32 %s1494_s9, 4  ;;  %s1603_s10 = int_to_ptr.vmem [resolvable:$true] %s229_s10 }
  0x12   : > { %s1319_s13 = scalar_lea.hbm %s1938_s1, 2048 }
  0x13   : > { %p1599_p11 = pnand %p1169_p9, %p1568_p1  ;;  %p1320_p12 = scmp.ne.s32.totalorder %s1938_s1, %s1319_s13 }
  0x14   : > { %p1326_p5 = scmp.lt.u32.totalorder %s1319_s13, %s1938_s1 }
  0x15   : > { %p1321_p13 = pneg %p1599_p11 }
  0x17   : > { %p1322_p0 = pnand %p1321_p13, %p1320_p12 }
  0x19   : > { %p1323_p3 = pneg %p1322_p0 }
  0x1b   : > { %p1328_p7 = pnand %p1326_p5, %p1323_p3 }
  0x1d   : > { %1331 = shalt.err (!%p1328_p7)
}
  0x1e   : > { %s1332_s24 = scalar_lea.vmem %s1592_s7, 2048  ;;  %p1340_p1 = scmp.lt.s32.totalorder %s1592_s7, %s1592_s7 }
  0x1f   : > { %p1333_p9 = scmp.ne.s32.totalorder %s1592_s7, %s1332_s24  ;;  %p1341_p12 = scmp.lt.s32.totalorder %s1332_s24, %s1332_s24 }
  0x21   : > { %p1335_p10 = pnand %p1333_p9, %p1321_p13  ;;  %p1342_p0 = por %p1341_p12, %p1340_p1 }
  0x23   : > { %p1336_p6 = pneg %p1335_p10 }
  0x25   : > { %p1343_p4 = pnand %p1342_p0, %p1336_p6 }
  0x27   : > { %1346 = shalt.err (!%p1343_p4)
}
  0x28   : > { %s1946_s25 = smov 128   ;;  %s1496_s6 = smov 8  }
  0x29   : > { %1172 = dma.hbm_to_vmem [thread:$0]  (!%p1599_p11), %s1938_s1, 2048, %s1592_s7, [#allocation7], %s1946_s25, %s1946_s25, %s1496_s6  }
  0x2a   : > { %s1347_s14 = scalar_lea.hbm %s1940_s3, 2048 }
  0x2b   : > { %p1348_p1 = scmp.ne.s32.totalorder %s1940_s3, %s1347_s14  ;;  %p1354_p10 = scmp.lt.u32.totalorder %s1347_s14, %s1940_s3 }
  0x2d   : > { %p1350_p4 = pnand %p1348_p1, %p1321_p13 }
  0x2f   : > { %p1351_p6 = pneg %p1350_p4 }
  0x31   : > { %p1356_p3 = pnand %p1354_p10, %p1351_p6 }
  0x33   : > { %1359 = shalt.err (!%p1356_p3)
}
  0x34   : > { %s1360_s7 = scalar_lea.vmem %s1603_s10, 2048  ;;  %p1368_p12 = scmp.lt.s32.totalorder %s1603_s10, %s1603_s10 }
  0x35   : > { %p1361_p5 = scmp.ne.s32.totalorder %s1603_s10, %s1360_s7  ;;  %p1369_p0 = scmp.lt.s32.totalorder %s1360_s7, %s1360_s7 }
  0x37   : > { %p1363_p7 = pnand %p1361_p5, %p1321_p13  ;;  %p1370_p1 = por %p1369_p0, %p1368_p12 }
  0x39   : > { %p1364_p9 = pneg %p1363_p7 }
  0x3b   : > { %p1371_p4 = pnand %p1370_p1, %p1364_p9 }
  0x3d   : > { %1374 = shalt.err (!%p1371_p4)
}
  0x3e   : > { %s1497_s9 = smov 64   ;;  %s1498_s11 = smov 4  }
  0x3f   : > { %1175 = dma.hbm_to_vmem [thread:$0]  (!%p1599_p11), %s1940_s3, 2048, %s1603_s10, [#allocation7], %s1497_s9, %s1497_s9, %s1498_s11  }
  0x40   : > { %s34_s14 = sadd.s32 1, %s1487_s22  ;;  %s41_s15 = sadd.s32 1, %s1479_s20 }
  0x41   : > { %p36_p13 = scmp.ge.s32.totalorder %s34_s14, 2  ;;  %p48_p6 = scmp.ne.s32.totalorder %s1479_s20, %s1475_s19 }
  0x42   : > { %p49_p10 = scmp.eq.s32.totalorder %s1491_s23, 0  ;;  %p1186_p3 = scmp.lt.s32.totalorder %s1491_s23, 2 }
  0x43   : > { %s1968_s14 = smov (%p36_p13, %s34_s14), 0  ;;  %p1670_p7 = por %p1572_p2, %p48_p6 }
  0x44   : > { %p50_p5 = por %p49_p10, %p48_p6  ;;  %s38_s8 = ssub.s32 %s1487_s22, %s1968_s14 }
  0x45   : > { %s1954_s16 = scalar_select %p1670_p7, 1, 0 }
  0x46   : > { %s246_s17 = sand.u32 1, %s1479_s20   ;;  %p39_p9 = scmp.eq.s32.totalorder %s38_s8, 0 }
  0x47   : > { %s1069_s10 = sshll.u32 %s246_s17, 6  ;;  %s1115_s24 = sshll.u32 %s1487_s22, 10 }
  0x48   : > { %s1679_s7 = scalar_select %p39_p9, %s1479_s20, %s41_s15  }
  0x49   : > { %s1684_s12 = scalar_lea.hbm %s1937_s0, %s1115_s24  ;;  %s250_s27 = scalar_lea.vmem [#allocation3], %s1069_s10 }
  0x4a   : > { %s257_s13 = sshll.u32 %s250_s27, 4  ;;  %p1688_p2 = pnand %p1186_p3, %p50_p5  ;;  %s1692_s13 = int_to_ptr.vmem [resolvable:$true] %s257_s13 }
  0x4b   : > { %s1694_s15 = scalar_lea.sflag [#allocation4], %s246_s17  ;;  %s1375_s8 = scalar_lea.hbm %s1684_s12, 1024 }
  0x4c   : > { %p1376_p11 = scmp.ne.s32.totalorder %s1684_s12, %s1375_s8  ;;  %p1377_p12 = pneg %p1688_p2 }
  0x4d   : > { %s1380_s9 = scalar_lea.hbm %s1937_s0, 2048  ;;  %p1381_p4 = scmp.lt.u32.totalorder %s1684_s12, %s1937_s0 }
  0x4e   : > { %p1378_p0 = pnand %p1377_p12, %p1376_p11  ;;  %p1382_p13 = scmp.lt.u32.totalorder %s1380_s9, %s1375_s8 }
  0x4f   : > { %p1384_p10 = scmp.lt.u32.totalorder %s1375_s8, %s1684_s12 }
  0x50   : > { %p1379_p1 = pneg %p1378_p0  ;;  %p1383_p6 = por %p1382_p13, %p1381_p4 }
  0x52   : > { %p1385_p3 = por %p1384_p10, %p1383_p6 }
  0x54   : > { %p1386_p5 = pnand %p1385_p3, %p1379_p1 }
  0x56   : > { %1389 = shalt.err (!%p1386_p5)
}
  0x57   : > { %s1390_s17 = scalar_lea.vmem %s1692_s13, 1024  ;;  %s1499_s10 = smov [#allocation3]  }
  0x58   : > { %p1391_p9 = scmp.ne.s32.totalorder %s1692_s13, %s1390_s17  ;;  %s1395_s24 = sshll.u32 %s1499_s10, 4  ;;  %s1396_s24 = int_to_ptr.vmem [resolvable:$false] %s1395_s24 }
  0x59   : > { %s1397_s11 = scalar_lea.vmem %s1396_s24, 2048  ;;  %p1398_p7 = scmp.lt.s32.totalorder %s1692_s13, %s1396_s24 }
  0x5a   : > { %p1393_p11 = pnand %p1391_p9, %p1377_p12  ;;  %p1399_p4 = scmp.lt.s32.totalorder %s1397_s11, %s1390_s17 }
  0x5c   : > { %p1394_p0 = pneg %p1393_p11  ;;  %p1400_p13 = por %p1399_p4, %p1398_p7 }
  0x5e   : > { %p1401_p6 = pnand %p1400_p13, %p1394_p0 }
  0x60   : > { %1404 = shalt.err (!%p1401_p6)
}
  0x61   : > { %s1956_s8 = smov 128   ;;  %269 = sbr.rel (%p1588_p8) target bundleno = 648 (0x288), region = 40 }
  0x62   : > { %1179 = dma.hbm_to_vmem [thread:$0]  (!%p1688_p2), %s1684_s12, 1024, %s1692_s13, %s1694_s15, %s1956_s8, %s1956_s8, %s1496_s6  }
  0x63   : > { %s1728_s9 = sand.u32 (!%p1588_p8), 1, %s1475_s19   ;;  %p1957_p7 = scmp.ne.s32.totalorder (!%p1588_p8), %s1950_s28, 0 }
  0x64   : > { %s1073_s27 = sshll.u32 (!%p1588_p8), %s1728_s9, 6  ;;  %s272_s17 = scalar_lea.sflag (!%p1588_p8), [#allocation4], %s1728_s9 }
  0x65   : > { %s1734_s25 = scalar_lea.vmem (!%p1588_p8), [#allocation3], %s1073_s27 }
  0x68   : > { %1458 = dma.done.wait (%p1957_p7), %s272_s17, 1024  }
  0x69   : > { %1460 = vsyncadd (%p1957_p7), %s272_s17, 4294966272  ;;  %p1958_p2 = scmp.ne.s32.totalorder %s1948_s26, 0 }
  0x6b   : > { %1462 = dma.done.wait (%p1958_p2), [#allocation7], 4096  }
  0x6c   : > { %1464 = vsyncadd (%p1958_p2), [#allocation7], 4294963200  ;;  %v1500_v0 = vmov 0   ;;  %v1247_v1 = vld [vmem:[#allocation6 + $0x4] ss:$8 sps:$4 sm:$0xff]   ;;  %v338_v20 = vld [vmem:[%s1734_s25 + $0x10] sm:$0xff]  ;;  %v366_v45 = vlaneseq }
  0x6d   : > { %488 = vmatprep.mubr.bf16.mxu0 %v1500_v0  ;;  %v1249_v2 = vld [vmem:[#allocation6] ss:$8 sps:$4 sm:$0xff]   ;;  %456 = vmatprep.subr.bf16.mxu0 %v1247_v1  ;;  %v1250_v3 = vld [vmem:[#allocation6 + $0x14] ss:$8 sps:$4 sm:$0xff]   ;;  %v1252_v4 = vld [vmem:[#allocation6 + $0x10] ss:$8 sps:$4 sm:$0xff]  }
  0x6e   : > { %457 = vmatpush1.bf16.msra.mxu0 %v1249_v2  ;;  %v1253_v5 = vld [vmem:[#allocation6 + $0x24] ss:$8 sps:$4 sm:$0xff]   ;;  %v1255_v6 = vld [vmem:[#allocation6 + $0x20] ss:$8 sps:$4 sm:$0xff]   ;;  %v1256_v7 = vld [vmem:[#allocation6 + $0x34] ss:$8 sps:$4 sm:$0xff]  }
  0x6f   : > { %458 = vmatprep.subr.bf16.mxu0 %v1250_v3  ;;  %v1258_v8 = vld [vmem:[#allocation6 + $0x30] ss:$8 sps:$4 sm:$0xff]   ;;  %v1259_v9 = vld [vmem:[#allocation6 + $0x44] ss:$8 sps:$4 sm:$0xff]   ;;  %v1261_v10 = vld [vmem:[#allocation6 + $0x40] ss:$8 sps:$4 sm:$0xff]  }
  0x70   : > { %v1262_v11 = vld [vmem:[#allocation6 + $0x54] ss:$8 sps:$4 sm:$0xff]   ;;  %v1264_v12 = vld [vmem:[#allocation6 + $0x50] ss:$8 sps:$4 sm:$0xff]   ;;  %v1265_v13 = vld [vmem:[#allocation6 + $0x64] ss:$8 sps:$4 sm:$0xff]  }
  0x71   : > { %v1267_v14 = vld [vmem:[#allocation6 + $0x60] ss:$8 sps:$4 sm:$0xff]   ;;  %v1268_v15 = vld [vmem:[#allocation6 + $0x74] ss:$8 sps:$4 sm:$0xff]   ;;  %v1270_v16 = vld [vmem:[#allocation6 + $0x70] ss:$8 sps:$4 sm:$0xff]  }
  0x72   : > { %459 = vmatpush1.bf16.msra.mxu0 %v1252_v4  ;;  %v336_v17 = vld [vmem:[%s1734_s25] sm:$0xff]  ;;  %v337_v18 = vld [vmem:[%s1734_s25 + $0x8] sm:$0xff]  ;;  %v339_v21 = vld [vmem:[%s1734_s25 + $0x18] sm:$0xff]  ;;  %v367_v46 = vshrl.u32 %v366_v45, 7  ;;  %s1871_s12 = scalar_lea.vmem [#allocation9], %s1073_s27  ;;  %s1116_s15 = sshll.u32 %s1483_s21, 10 }
  0x73   : > { %460 = vmatprep.subr.bf16.mxu0 %v1253_v5  ;;  %v344_v19 = vpack.c.bf16 %v337_v18, %v336_v17  ;;  %v345_v22 = vpack.c.bf16 %v339_v21, %v338_v20  ;;  %v340_v23 = vld [vmem:[%s1734_s25 + $0x20] sm:$0xff]  ;;  %v341_v24 = vld [vmem:[%s1734_s25 + $0x28] sm:$0xff]  ;;  %v342_v26 = vld [vmem:[%s1734_s25 + $0x30] sm:$0xff]  ;;  %s946_s13 = sshll.u32 %s1871_s12, 4  ;;  %s1886_s11 = scalar_lea.hbm %s1942_s5, %s1116_s15  ;;  %s1881_s13 = int_to_ptr.vmem [resolvable:$true] %s946_s13 }
  0x74   : > { %v346_v25 = vpack.c.bf16 %v341_v24, %v340_v23  ;;  %v343_v27 = vld [vmem:[%s1734_s25 + $0x38] sm:$0xff]  ;;  %v1271_v29 = vld [vmem:[#allocation8 + $0x40] sm:$0xff]   ;;  %v1273_v31 = vld [vmem:[#allocation8 + $0x48] sm:$0xff]   ;;  %v368_v47 = vsub.s32 0, %v367_v46  ;;  %v372_v49 = vsub.s32 1, %v367_v46  ;;  %s933_s8 = scalar_lea.sflag [#allocation5], %s1728_s9 }
  0x75   : > { %v347_v28 = vpack.c.bf16 %v343_v27, %v342_v26  ;;  %v1272_v30 = vld [vmem:[#allocation8] sm:$0xff]   ;;  %1117 = vmatprep.subr.bf16.mxu1 %v1271_v29  ;;  %v1274_v32 = vld [vmem:[#allocation8 + $0x8] sm:$0xff]   ;;  %v1275_v33 = vld [vmem:[#allocation8 + $0x50] sm:$0xff]   ;;  %s1405_s27 = scalar_lea.vmem %s1881_s13, 1024  ;;  %p1959_p12 = scmp.ne.s32.totalorder %s1954_s16, 0 }
  0x76   : > { %461 = vmatpush1.bf16.msra.mxu0 %v1255_v6  ;;  %1118 = vmatpush3.bf16.msra.mxu1 %v1272_v30  ;;  %v1276_v34 = vld [vmem:[#allocation8 + $0x10] sm:$0xff]   ;;  %v1277_v35 = vld [vmem:[#allocation8 + $0x58] sm:$0xff]   ;;  %v1279_v37 = vld [vmem:[#allocation8 + $0x60] sm:$0xff]   ;;  %p1406_p8 = scmp.ne.s32.totalorder %s1881_s13, %s1405_s27  ;;  %s1501_s21 = smov [#allocation9]  }
  0x77   : > { %462 = vmatprep.subr.bf16.mxu0 %v1256_v7  ;;  %1119 = vmatprep.subr.bf16.mxu1 %v1273_v31  ;;  %v1278_v36 = vld [vmem:[#allocation8 + $0x18] sm:$0xff]   ;;  %v1280_v38 = vld [vmem:[#allocation8 + $0x20] sm:$0xff]   ;;  %v1281_v39 = vld [vmem:[#allocation8 + $0x68] sm:$0xff]   ;;  %s1409_s17 = sshll.u32 %s1501_s21, 4  ;;  %s1410_s17 = int_to_ptr.vmem [resolvable:$false] %s1409_s17 }
  0x78   : > { %v1282_v40 = vld [vmem:[#allocation8 + $0x28] sm:$0xff]   ;;  %v1283_v41 = vld [vmem:[#allocation8 + $0x70] sm:$0xff]   ;;  %v1285_v43 = vld [vmem:[#allocation8 + $0x78] sm:$0xff]   ;;  %p1407_p1 = pnand %p1406_p8, %p1959_p12  ;;  %s1411_s25 = scalar_lea.vmem %s1410_s17, 2048 }
  0x79   : > { %v1284_v42 = vld [vmem:[#allocation8 + $0x30] sm:$0xff]   ;;  %v1286_v44 = vld [vmem:[#allocation8 + $0x38] sm:$0xff]   ;;  %v364_v48 = vld [vmem:[%s1939_s2] sm:$0x3]  ;;  %p1412_p3 = scmp.lt.s32.totalorder %s1881_s13, %s1410_s17  ;;  %p1413_p5 = scmp.lt.s32.totalorder %s1411_s25, %s1405_s27 }
  0x7a   : > { %463 = vmatpush1.bf16.msra.mxu0 %v1258_v8  ;;  %1120 = vmatpush3.bf16.msra.mxu1 %v1274_v32  ;;  %v1755_v50 = vrot.slane %v364_v48, %v368_v47  ;;  %v1757_v51 = vrot.slane %v364_v48, %v372_v49  ;;  %p1408_p10 = pneg %p1407_p1 }
  0x7b   : > { %464 = vmatprep.subr.bf16.mxu0 %v1259_v9  ;;  %1121 = vmatprep.subr.bf16.mxu1 %v1275_v33  ;;  %p1414_p9 = por %p1413_p5, %p1412_p3 }
  0x7d   : > { %p1415_p11 = pnand %p1414_p9, %p1408_p10 }
  0x7e   : > { %465 = vmatpush1.bf16.msra.mxu0 %v1261_v10  ;;  %1122 = vmatpush3.bf16.msra.mxu1 %v1276_v34 }
  0x7f   : > { %466 = vmatprep.subr.bf16.mxu0 %v1262_v11  ;;  %1123 = vmatprep.subr.bf16.mxu1 %v1277_v35 }
  0x82   : > { %467 = vmatpush1.bf16.msra.mxu0 %v1264_v12  ;;  %1124 = vmatpush3.bf16.msra.mxu1 %v1278_v36 }
  0x83   : > { %468 = vmatprep.subr.bf16.mxu0 %v1265_v13  ;;  %1125 = vmatprep.subr.bf16.mxu1 %v1279_v37 }
  0x86   : > { %469 = vmatpush1.bf16.msra.mxu0 %v1267_v14  ;;  %1126 = vmatpush3.bf16.msra.mxu1 %v1280_v38 }
  0x87   : > { %470 = vmatprep.subr.bf16.mxu0 %v1268_v15  ;;  %1127 = vmatprep.subr.bf16.mxu1 %v1281_v39 }
  0x8a   : > { %471 = vmatpush1.bf16.msra.mxu0 %v1270_v16  ;;  %1128 = vmatpush3.bf16.msra.mxu1 %v1282_v40 }
  0x8b   : > { %1129 = vmatprep.subr.bf16.mxu1 %v1283_v41 }
  0x8d   : > { %489 = vmatmul.mubr.bf16.vlgmr.msra.gmra.mrb[0].mxu0 %v344_v19 }
  0x8e   : > { %498 = vmatprep.mubr.bf16.mxu0 %v1500_v0  ;;  %1130 = vmatpush3.bf16.msra.mxu1 %v1284_v42 }
  0x8f   : > { %1131 = vmatprep.subr.bf16.mxu1 %v1285_v43 }
  0x92   : > { %1132 = vmatpush3.bf16.msra.mxu1 %v1286_v44 }
  0x95   : > { %499 = vmatmul.mubr.bf16.gmra.mrb[4].mxu0 %v345_v22 }
  0x96   : > { %508 = vmatprep.mubr.bf16.mxu0 %v1500_v0 }
  0x9d   : > { %509 = vmatmul.mubr.bf16.gmra.mrb[8].mxu0 %v346_v25 }
  0x9e   : > { %518 = vmatprep.mubr.bf16.mxu0 %v1500_v0 }
  0xa5   : > { %519 = vmatmul.mubr.bf16.gmra.mrb[12].mxu0 %v347_v28 }
 0x160   : > { %v490_v52 = vpop.f32.mrb[0].mxu0 }
 0x161   : > { %v491_v53 = vadd.f32 %v490_v52, %v1755_v50  ;;  %v492_v54 = vpop.f32.mrb[1].mxu0 }
 0x162   : > { %v493_v55 = vadd.f32 %v492_v54, %v1757_v51  ;;  %v494_v56 = vpop.f32.mrb[2].mxu0 }
 0x163   : > { %v545_v57 = vmul.f32 0.044715, %v491_v53  ;;  %v1762_v58 = vadd.f32 %v494_v56, %v1755_v50  ;;  %v496_v59 = vpop.f32.mrb[3].mxu0  ;;  %v529_v38 = vmul.f32 0.5, %v491_v53 }
 0x164   : > { %v546_v60 = vmul.f32 0.044715, %v493_v55  ;;  %v1765_v61 = vadd.f32 %v496_v59, %v1757_v51  ;;  %v530_v47 = vmul.f32 0.5, %v493_v55 }
 0x165   : > { %v561_v62 = vmul.f32 %v545_v57, %v491_v53  ;;  %v547_v63 = vmul.f32 0.044715, %v1762_v58 }
 0x166   : > { %v548_v0 = vmul.f32 0.044715, %v1765_v61  ;;  %v562_v1 = vmul.f32 %v546_v60, %v493_v55 }
 0x167   : > { %v577_v2 = vmul.f32 %v561_v62, %v491_v53  ;;  %v563_v3 = vmul.f32 %v547_v63, %v1762_v58 }
 0x168   : > { %v500_v4 = vpop.f32.mrb[4].mxu0  ;;  %v564_v5 = vmul.f32 %v548_v0, %v1765_v61  ;;  %v578_v6 = vmul.f32 %v562_v1, %v493_v55 }
 0x169   : > { %v579_v7 = vmul.f32 %v563_v3, %v1762_v58  ;;  %v1773_v8 = vadd.f32 %v500_v4, %v1755_v50  ;;  %v502_v9 = vpop.f32.mrb[5].mxu0  ;;  %v593_v10 = vadd.f32 %v577_v2, %v491_v53  ;;  %v532_v2 = vmul.f32 0.5, %v1765_v61 }
 0x16a   : > { %v503_v11 = vadd.f32 %v502_v9, %v1757_v51  ;;  %v504_v12 = vpop.f32.mrb[6].mxu0  ;;  %v580_v13 = vmul.f32 %v564_v5, %v1765_v61  ;;  %v594_v14 = vadd.f32 %v578_v6, %v493_v55  ;;  %v531_v3 = vmul.f32 0.5, %v1762_v58 }
 0x16b   : > { %v549_v15 = vmul.f32 0.044715, %v1773_v8  ;;  %v1779_v16 = vadd.f32 %v504_v12, %v1755_v50  ;;  %v506_v17 = vpop.f32.mrb[7].mxu0  ;;  %v595_v18 = vadd.f32 %v579_v7, %v1762_v58  ;;  %v609_v19 = vmul.f32 0.7978846, %v593_v10 }
 0x16c   : > { %v550_v20 = vmul.f32 0.044715, %v503_v11  ;;  %v1783_v21 = vadd.f32 %v506_v17, %v1757_v51  ;;  %v596_v22 = vadd.f32 %v580_v13, %v1765_v61  ;;  %v610_v23 = vmul.f32 0.7978846, %v594_v14 }
 0x16d   : > { %v565_v24 = vmul.f32 %v549_v15, %v1773_v8  ;;  %v551_v25 = vmul.f32 0.044715, %v1779_v16  ;;  %v611_v26 = vmul.f32 0.7978846, %v595_v18  ;;  %1287 = vtanh.f32 %v609_v19 }
 0x16e   : > { %v566_v27 = vmul.f32 %v550_v20, %v503_v11  ;;  %v552_v28 = vmul.f32 0.044715, %v1783_v21  ;;  %v612_v29 = vmul.f32 0.7978846, %v596_v22  ;;  %1289 = vtanh.f32 %v610_v23 }
 0x16f   : > { %v581_v30 = vmul.f32 %v565_v24, %v1773_v8  ;;  %v567_v31 = vmul.f32 %v551_v25, %v1779_v16  ;;  %1291 = vtanh.f32 %v611_v26  ;;  %v534_v9 = vmul.f32 0.5, %v503_v11 }
 0x170   : > { %v582_v32 = vmul.f32 %v566_v27, %v503_v11  ;;  %v568_v33 = vmul.f32 %v552_v28, %v1783_v21  ;;  %v510_v34 = vpop.f32.mrb[8].mxu0  ;;  %1293 = vtanh.f32 %v612_v29 }
 0x171   : > { %v583_v35 = vmul.f32 %v567_v31, %v1779_v16  ;;  %v1794_v36 = vadd.f32 %v510_v34, %v1755_v50  ;;  %v512_v37 = vpop.f32.mrb[9].mxu0  ;;  %v597_v43 = vadd.f32 %v581_v30, %v1773_v8 }
 0x172   : > { %v584_v39 = vmul.f32 %v568_v33, %v1783_v21  ;;  %v1798_v40 = vadd.f32 %v512_v37, %v1757_v51  ;;  %v514_v41 = vpop.f32.mrb[10].mxu0  ;;  %v598_v42 = vadd.f32 %v582_v32, %v503_v11 }
 0x173   : > { %v553_v44 = vmul.f32 0.044715, %v1794_v36  ;;  %v1803_v45 = vadd.f32 %v514_v41, %v1755_v50  ;;  %v516_v46 = vpop.f32.mrb[11].mxu0  ;;  %v599_v48 = vadd.f32 %v583_v35, %v1779_v16  ;;  %v613_v59 = vmul.f32 0.7978846, %v597_v43 }
 0x174   : > { %v554_v49 = vmul.f32 0.044715, %v1798_v40  ;;  %v1808_v52 = vadd.f32 %v516_v46, %v1757_v51  ;;  %v600_v53 = vadd.f32 %v584_v39, %v1783_v21  ;;  %v614_v54 = vmul.f32 0.7978846, %v598_v42 }
 0x175   : > { %v569_v56 = vmul.f32 %v553_v44, %v1794_v36  ;;  %v555_v57 = vmul.f32 0.044715, %v1803_v45  ;;  %v615_v60 = vmul.f32 0.7978846, %v599_v48  ;;  %v533_v46 = vmul.f32 0.5, %v1773_v8 }
 0x176   : > { %v570_v62 = vmul.f32 %v554_v49, %v1798_v40  ;;  %v556_v55 = vmul.f32 0.044715, %v1808_v52  ;;  %v616_v63 = vmul.f32 0.7978846, %v600_v53  ;;  %1295 = vtanh.f32 %v614_v54 }
 0x177   : > { %v1288_v0 = vpop.eup %1287  ;;  %v571_v1 = vmul.f32 %v555_v57, %v1803_v45  ;;  %1297 = vtanh.f32 %v613_v59  ;;  %v585_v58 = vmul.f32 %v569_v56, %v1794_v36 }
 0x178   : > { %v1290_v4 = vpop.eup %1289  ;;  %v572_v5 = vmul.f32 %v556_v55, %v1808_v52  ;;  %v520_v6 = vpop.f32.mrb[12].mxu0  ;;  %v641_v7 = vadd.f32 1.0, %v1288_v0  ;;  %1299 = vtanh.f32 %v616_v63  ;;  %v586_v12 = vmul.f32 %v570_v62, %v1798_v40 }
 0x179   : > { %v1292_v10 = vpop.eup %1291  ;;  %v1821_v13 = vadd.f32 %v520_v6, %v1755_v50  ;;  %v522_v14 = vpop.f32.mrb[13].mxu0  ;;  %v642_v15 = vadd.f32 1.0, %v1290_v4  ;;  %1301 = vtanh.f32 %v615_v60  ;;  %v587_v20 = vmul.f32 %v571_v1, %v1803_v45 }
 0x17a   : > { %v1294_v61 = vpop.eup %1293  ;;  %v588_v17 = vmul.f32 %v572_v5, %v1808_v52  ;;  %v1826_v18 = vadd.f32 %v522_v14, %v1757_v51  ;;  %v524_v19 = vpop.f32.mrb[14].mxu0  ;;  %v643_v11 = vadd.f32 1.0, %v1292_v10  ;;  %v657_v28 = vmul.f32 %v641_v7, %v529_v38 }
 0x17b   : > { %v557_v22 = vmul.f32 0.044715, %v1821_v13  ;;  %v1831_v23 = vadd.f32 %v524_v19, %v1755_v50  ;;  %v526_v24 = vpop.f32.mrb[15].mxu0  ;;  %v644_v25 = vadd.f32 1.0, %v1294_v61  ;;  %v658_v31 = vmul.f32 %v642_v15, %v530_v47 }
 0x17c   : > { %v558_v26 = vmul.f32 0.044715, %v1826_v18  ;;  %v1835_v27 = vadd.f32 %v526_v24, %v1757_v51  ;;  %v659_v29 = vmul.f32 %v643_v11, %v531_v3  ;;  %v602_v33 = vadd.f32 %v586_v12, %v1798_v40 }
 0x17d   : > { %v559_v30 = vmul.f32 0.044715, %v1831_v23  ;;  %v660_v32 = vmul.f32 %v644_v25, %v532_v2  ;;  %v604_v37 = vadd.f32 %v588_v17, %v1808_v52  ;;  %v573_v39 = vmul.f32 %v557_v22, %v1821_v13 }
 0x17e   : > { %v574_v34 = vmul.f32 %v558_v26, %v1826_v18  ;;  %v560_v50 = vmul.f32 0.044715, %v1835_v27  ;;  %v681_v35 = vpack.c.bf16 %v659_v29, %v657_v28  ;;  %v536_v51 = vmul.f32 0.5, %v1783_v21 }
 0x17f   : > { %v682_v41 = vpack.c.bf16 %v660_v32, %v658_v31  ;;  %v618_v38 = vmul.f32 0.7978846, %v602_v33  ;;  %v575_v43 = vmul.f32 %v559_v30, %v1831_v23  ;;  %v620_v47 = vmul.f32 0.7978846, %v604_v37 }
 0x180   : > { %v1296_v42 = vpop.eup %1295  ;;  %v576_v44 = vmul.f32 %v560_v50, %v1835_v27  ;;  %v590_v49 = vmul.f32 %v574_v34, %v1826_v18  ;;  %v601_v54 = vadd.f32 %v585_v58, %v1794_v36  ;;  %v603_v59 = vadd.f32 %v587_v20, %v1803_v45 }
 0x181   : > { %v1298_v48 = vpop.eup %1297  ;;  %849 = vmatprep.mubr.bf16.mxu1 %v682_v41  ;;  %v646_v53 = vadd.f32 1.0, %v1296_v42  ;;  %1303 = vtanh.f32 %v618_v38  ;;  %v589_v8 = vmul.f32 %v573_v39, %v1821_v13  ;;  %v535_v55 = vmul.f32 0.5, %v1779_v16 }
 0x182   : > { %v1300_v56 = vpop.eup %1299  ;;  %v592_v21 = vmul.f32 %v576_v44, %v1835_v27  ;;  %850 = vmatmul.mubr.bf16.vlgmr.msra.gmra.mrb[0].mxu1 %v681_v35  ;;  %v645_v57 = vadd.f32 1.0, %v1298_v48  ;;  %1305 = vtanh.f32 %v620_v47  ;;  %v617_v63 = vmul.f32 0.7978846, %v601_v54 }
 0x183   : > { %v1302_v60 = vpop.eup %1301  ;;  %v648_v62 = vadd.f32 1.0, %v1300_v56  ;;  %v591_v0 = vmul.f32 %v575_v43, %v1831_v23  ;;  %v662_v1 = vmul.f32 %v646_v53, %v534_v9  ;;  %v619_v3 = vmul.f32 0.7978846, %v603_v59 }
 0x184   : > { %v647_v2 = vadd.f32 1.0, %v1302_v60  ;;  %1307 = vtanh.f32 %v617_v63  ;;  %v606_v5 = vadd.f32 %v590_v49, %v1826_v18  ;;  %v608_v6 = vadd.f32 %v592_v21, %v1835_v27 }
 0x185   : > { %v664_v4 = vmul.f32 %v648_v62, %v536_v51  ;;  %v661_v7 = vmul.f32 %v645_v57, %v533_v46  ;;  %1309 = vtanh.f32 %v619_v3  ;;  %v605_v16 = vadd.f32 %v589_v8, %v1821_v13 }
 0x186   : > { %v663_v10 = vmul.f32 %v647_v2, %v535_v55  ;;  %v622_v14 = vmul.f32 0.7978846, %v606_v5  ;;  %v624_v15 = vmul.f32 0.7978846, %v608_v6  ;;  %v607_v58 = vadd.f32 %v591_v0, %v1831_v23 }
 0x187   : > { %v684_v12 = vpack.c.bf16 %v664_v4, %v662_v1  ;;  %v621_v9 = vmul.f32 0.7978846, %v605_v16  ;;  %v538_v22 = vmul.f32 0.5, %v1798_v40  ;;  %v540_v24 = vmul.f32 0.5, %v1808_v52 }
 0x188   : > { %v683_v61 = vpack.c.bf16 %v663_v10, %v661_v7  ;;  %1311 = vtanh.f32 %v622_v14  ;;  %v623_v17 = vmul.f32 0.7978846, %v607_v58  ;;  %v537_v33 = vmul.f32 0.5, %v1794_v36 }
 0x189   : > { %857 = vmatprep.mubr.bf16.mxu1 %v684_v12  ;;  %1313 = vtanh.f32 %v624_v15  ;;  %v539_v34 = vmul.f32 0.5, %v1803_v45  ;;  %v542_v38 = vmul.f32 0.5, %v1826_v18  ;;  %v544_v42 = vmul.f32 0.5, %v1835_v27 }
 0x18a   : > { %858 = vmatmul.mubr.bf16.gmra.mrb[4].mxu1 %v683_v61  ;;  %1315 = vtanh.f32 %v621_v9  ;;  %v541_v46 = vmul.f32 0.5, %v1821_v13  ;;  %v543_v48 = vmul.f32 0.5, %v1831_v23  ;;  %v1109_v13 = vld [vmem:[%s1941_s4] ss:$0 sm:$0xff] }
 0x18b   : > { %v1304_v19 = vpop.eup %1303  ;;  %1317 = vtanh.f32 %v623_v17 }
 0x18c   : > { %v1306_v11 = vpop.eup %1305  ;;  %v650_v20 = vadd.f32 1.0, %v1304_v19 }
 0x18d   : > { %v652_v25 = vadd.f32 1.0, %v1306_v11 }
 0x18e   : > { %v1308_v26 = vpop.eup %1307  ;;  %v666_v28 = vmul.f32 %v650_v20, %v538_v22 }
 0x18f   : > { %v668_v29 = vmul.f32 %v652_v25, %v540_v24  ;;  %v1310_v30 = vpop.eup %1309  ;;  %v649_v31 = vadd.f32 1.0, %v1308_v26 }
 0x190   : > { %v651_v50 = vadd.f32 1.0, %v1310_v30 }
 0x191   : > { %v686_v32 = vpack.c.bf16 %v668_v29, %v666_v28  ;;  %v665_v37 = vmul.f32 %v649_v31, %v537_v33 }
 0x192   : > { %v1312_v35 = vpop.eup %1311  ;;  %v667_v39 = vmul.f32 %v651_v50, %v539_v34 }
 0x193   : > { %865 = vmatprep.mubr.bf16.mxu1 %v686_v32  ;;  %v1314_v41 = vpop.eup %1313  ;;  %v654_v40 = vadd.f32 1.0, %v1312_v35 }
 0x194   : > { %v1316_v51 = vpop.eup %1315  ;;  %v685_v52 = vpack.c.bf16 %v667_v39, %v665_v37  ;;  %v656_v43 = vadd.f32 1.0, %v1314_v41 }
 0x195   : > { %v1318_v44 = vpop.eup %1317  ;;  %v653_v36 = vadd.f32 1.0, %v1316_v51  ;;  %v670_v45 = vmul.f32 %v654_v40, %v542_v38 }
 0x196   : > { %866 = vmatmul.mubr.bf16.gmra.mrb[8].mxu1 %v685_v52  ;;  %v672_v47 = vmul.f32 %v656_v43, %v544_v42  ;;  %v655_v49 = vadd.f32 1.0, %v1318_v44 }
 0x197   : > { %v669_v54 = vmul.f32 %v653_v36, %v541_v46 }
 0x198   : > { %v688_v53 = vpack.c.bf16 %v672_v47, %v670_v45  ;;  %v671_v56 = vmul.f32 %v655_v49, %v543_v48 }
 0x19a   : > { %873 = vmatprep.mubr.bf16.mxu1 %v688_v53  ;;  %v687_v21 = vpack.c.bf16 %v671_v56, %v669_v54 }
 0x19e   : > { %874 = vmatmul.mubr.bf16.gmra.mrb[12].mxu1 %v687_v21 }
 0x255   : > { %v1133_v18 = vpop.f32.mrb[0].mxu1 }
 0x256   : > { %v1134_v27 = vpop.f32.mrb[1].mxu1 }
 0x257   : > { %v1135_v57 = vadd.f32 %v1134_v27, %v1133_v18  ;;  %v1136_v59 = vpop.f32.mrb[2].mxu1 }
 0x258   : > { %v1137_v60 = vpop.f32.mrb[3].mxu1 }
 0x259   : > { %v916_v8 = vadd.f32 %v1135_v57, %v1109_v13  ;;  %v1138_v62 = vadd.f32 %v1137_v60, %v1136_v59 }
 0x25b   : > { %924 = vst [vmem:[%s1871_s12] sm:$0xff] %v916_v8  ;;  %v917_v23 = vadd.f32 %v1138_v62, %v1109_v13 }
 0x25d   : > { %925 = vst [vmem:[%s1871_s12 + $0x8] sm:$0xff] %v917_v23  ;;  %v1139_v55 = vpop.f32.mrb[4].mxu1 }
 0x25e   : > { %v1140_v63 = vpop.f32.mrb[5].mxu1 }
 0x25f   : > { %v1141_v0 = vadd.f32 %v1140_v63, %v1139_v55  ;;  %v1142_v1 = vpop.f32.mrb[6].mxu1 }
 0x260   : > { %v1143_v2 = vpop.f32.mrb[7].mxu1 }
 0x261   : > { %v918_v3 = vadd.f32 %v1141_v0, %v1109_v13  ;;  %v1144_v4 = vadd.f32 %v1143_v2, %v1142_v1 }
 0x263   : > { %926 = vst [vmem:[%s1871_s12 + $0x10] sm:$0xff] %v918_v3  ;;  %v919_v5 = vadd.f32 %v1144_v4, %v1109_v13 }
 0x265   : > { %927 = vst [vmem:[%s1871_s12 + $0x18] sm:$0xff] %v919_v5 }
 0x269   : > { %v1145_v6 = vpop.f32.mrb[8].mxu1 }
 0x26a   : > { %v1146_v7 = vpop.f32.mrb[9].mxu1 }
 0x26b   : > { %v1147_v10 = vadd.f32 %v1146_v7, %v1145_v6  ;;  %v1148_v12 = vpop.f32.mrb[10].mxu1 }
 0x26c   : > { %v1149_v14 = vpop.f32.mrb[11].mxu1 }
 0x26d   : > { %v920_v15 = vadd.f32 %v1147_v10, %v1109_v13  ;;  %v1150_v16 = vadd.f32 %v1149_v14, %v1148_v12 }
 0x26f   : > { %928 = vst [vmem:[%s1871_s12 + $0x20] sm:$0xff] %v920_v15  ;;  %v921_v61 = vadd.f32 %v1150_v16, %v1109_v13 }
 0x271   : > { %929 = vst [vmem:[%s1871_s12 + $0x28] sm:$0xff] %v921_v61  ;;  %v1151_v58 = vpop.f32.mrb[12].mxu1 }
 0x272   : > { %v1152_v9 = vpop.f32.mrb[13].mxu1 }
 0x273   : > { %v1153_v17 = vadd.f32 %v1152_v9, %v1151_v58  ;;  %v1154_v19 = vpop.f32.mrb[14].mxu1 }
 0x274   : > { %v1155_v11 = vpop.f32.mrb[15].mxu1 }
 0x275   : > { %v922_v20 = vadd.f32 %v1153_v17, %v1109_v13  ;;  %v1156_v22 = vadd.f32 %v1155_v11, %v1154_v19 }
 0x277   : > { %930 = vst [vmem:[%s1871_s12 + $0x30] sm:$0xff] %v922_v20  ;;  %v923_v24 = vadd.f32 %v1156_v22, %v1109_v13 }
 0x279   : > { %931 = vst [vmem:[%s1871_s12 + $0x38] sm:$0xff] %v923_v24 }
 0x27a   : > { %1418 = shalt.err (!%p1415_p11)
}
 0x27b   : > { %s1419_s26 = scalar_lea.hbm %s1886_s11, 1024  ;;  %s1423_s6 = scalar_lea.hbm %s1942_s5, 2048 }
 0x27c   : > { %p1420_p0 = scmp.ne.s32.totalorder %s1886_s11, %s1419_s26  ;;  %p1424_p6 = scmp.lt.u32.totalorder %s1886_s11, %s1942_s5 }
 0x27d   : > { %p1425_p7 = scmp.lt.u32.totalorder %s1423_s6, %s1419_s26  ;;  %p1427_p8 = scmp.lt.u32.totalorder %s1419_s26, %s1886_s11 }
 0x27e   : > { %p1421_p4 = pnand %p1420_p0, %p1959_p12 }
 0x27f   : > { %p1426_p2 = por %p1425_p7, %p1424_p6 }
 0x280   : > { %p1422_p13 = pneg %p1421_p4 }
 0x281   : > { %p1428_p1 = por %p1427_p8, %p1426_p2 }
 0x283   : > { %p1429_p10 = pnand %p1428_p1, %p1422_p13 }
 0x285   : > { %1432 = shalt.err (!%p1429_p10)
}
 0x286   : > { %s1502_s10 = smov 128   ;;  %s1503_s24 = smov 8  }
 0x287   : > { %1167 = dma.vmem_to_hbm [thread:$0]  (%p1959_p12), %s1881_s13, 1024, %s1886_s11, %s933_s8, %s1502_s10, %s1502_s10, %s1503_s24  }
 0x288 PF: > { %s961_s27 = sand.u32 1, %s1471_s18   ;;  %p1960_p3 = scmp.ne.s32.totalorder %s1951_s29, 0 }
 0x289   : > { %p1961_p5 = scmp.ge.s32.totalorder %s1491_s23, 2  ;;  %s962_s21 = scalar_lea.sflag [#allocation5], %s961_s27 }
 0x28b   : > { %p1181_p9 = pnand %p1961_p5, %p1960_p3 }
 0x28d   : > { %1466 = dma.done.wait (!%p1181_p9), %s962_s21, 1024  }
 0x28e   : > { %1468 = vsyncadd (!%p1181_p9), %s962_s21, 4294966272  ;;  %s22_s23 = sadd.s32 1, %s1491_s23   ;;  %s1962_s18 = smov %s1475_s19 }
 0x28f   : > { %p19_p11 = scmp.ge.s32.totalorder %s22_s23, 4   ;;  %s1963_s19 = smov %s1479_s20 }
 0x290   : > { %s1964_s20 = smov %s1679_s7  ;;  %s1965_s21 = smov %s1487_s22 }
 0x291   : > { %s1966_s22 = smov %s1968_s14  ;;  %21 = sbr.rel (!%p19_p11) target bundleno = 7 (0x7), region = 106 }
 0x298   :  { %967 = vsyncpa [#allocation4], 1 }
 0x299   :  { %969 = vsyncpa [#allocation4 + $0x1], 1 }
 0x29a   :  { %970 = vsyncpa [#allocation7], 1 }
 0x29b   :  { %971 = vsyncpa [#allocation5], 1 }
 0x29c   :  { %973 = vsyncpa [#allocation5 + $0x1], 1 }

</bundles_post_ra>
